<compile_context>
chip_gen: v6e
topology: v6e:2x2x1
jax: 0.10.0
libtpu: 0.0.40
codegen_flags: <defaults>
</compile_context>

<pallas_src>
import math

import jax
import jax.numpy as jnp
from jax.experimental import pallas as pl
from jax.experimental.pallas import tpu as pltpu

EPS = 1e-8
_BN_EVAL_SCALE = 1.0 / math.sqrt(1.0 + 1e-5)
_VMEM_LIMIT = 48 * 1024 * 1024   # safe on v5e(128M)/v6e(128M)/v7x(64M physical)


# ------------------------- plain-JAX (glue) helpers -------------------------
def _l2norm(x, axis=-1, eps=EPS):
    return x / (jnp.sqrt(jnp.sum(x * x, axis=axis, keepdims=True)) + eps)


# ------------------------- in-kernel helpers (EUP) ---------------------------
def _k_l2norm(x, axis=-1):
    # divide via approx reciprocal -> EUP slot instead of VPU divide
    return x * pl.reciprocal(
        jnp.sqrt(jnp.sum(x * x, axis=axis, keepdims=True)) + EPS, approx=True)


def _k_softmax_last(x):
    m = jnp.max(x, axis=-1, keepdims=True)
    e = jnp.exp(x - m)
    return e * pl.reciprocal(jnp.sum(e, axis=-1, keepdims=True), approx=True)


# ----------------------------------------------------------------------------
# Pallas kernel 1: EncoderImage  (row-tiled Linear + l2norm)
# ----------------------------------------------------------------------------
def _img_enc_kernel(x_ref, w_ref, b_ref, o_ref):
    y = jnp.dot(x_ref[...].astype(jnp.bfloat16), w_ref[...],
                preferred_element_type=jnp.float32)
    y = y + b_ref[...]
    o_ref[...] = _k_l2norm(y, axis=-1)


def _row_tile(n, target=512):
    # largest divisor of n that is <= target and a sublane multiple
    for t in range(min(n, target), 0, -1):
        if n % t == 0 and t % 8 == 0:
            return t
    return n


def encode_image(images, w, b):
    N, R, Di = images.shape
    E = w.shape[1]
    NR = N * R
    tm = _row_tile(NR, target=512)      # big tiles: mem-bound at realistic NR
    x2 = images.reshape(NR, Di).astype(jnp.float32)
    w_bf = w.astype(jnp.bfloat16)       # bf16 weights halve the constant DMA
    b2 = b.reshape(1, E)

    out = pl.pallas_call(
        _img_enc_kernel,
        out_shape=jax.ShapeDtypeStruct((NR, E), jnp.float32),
        grid=(NR // tm,),
        in_specs=[pl.BlockSpec((tm, Di), lambda i: (i, 0)),
                  pl.BlockSpec((Di, E), lambda i: (0, 0)),
                  pl.BlockSpec((1, E), lambda i: (0, 0))],
        out_specs=pl.BlockSpec((tm, E), lambda i: (i, 0)),
        compiler_params=pltpu.CompilerParams(
            dimension_semantics=("parallel",),
            vmem_limit_bytes=_VMEM_LIMIT),
    )(x2, w_bf, b2)
    return out.reshape(N, R, E)


# ----------------------------------------------------------------------------
# Pallas kernel 2: EncoderSimilarity hot path (caption tile vs all images)
# ----------------------------------------------------------------------------
def _similarity_kernel(cap_ref, capglo_ref, img_ref, imgglo_ref,
                       wloc_ref, bloc_ref, wglo_ref, bglo_ref,
                       wqk_ref, bqk_ref, wg_ref, bg_ref,
                       weval_ref, beval_ref, out_ref):
    TC, L, E = cap_ref.shape
    N, R, _ = img_ref.shape
    D = wloc_ref.shape[1]
    S = wg_ref.shape[0]
    n_tok = L + 1
    Mp = ((n_tok + 7) // 8) * 8          # pad token axis to a sublane multiple
    M = TC * L                           # merged word axis across the tile
    B = N * TC                           # fused (image, caption) batch (image-major)

    img = img_ref[...]                   # (N, R, E)  bf16, grid-constant
    img_glo = imgglo_ref[...]            # (N, E)     f32,  grid-constant
    cap = cap_ref[...]                   # (TC, L, E) f32
    cap_glo = capglo_ref[...].reshape(TC, E)

    # ---- SCAN attention, all captions of the tile fused along the word axis ----
    cap_m = cap.reshape(M, E).astype(jnp.bfloat16)
    cap_b = jnp.broadcast_to(cap_m[None], (N, M, E))            # one broadcast / tile
    attn = jnp.einsum('nme,nre->nmr', cap_b, img,
                      preferred_element_type=jnp.float32)       # (N, M, R)
    attn = jnp.where(attn > 0, attn, 0.1 * attn)                # LeakyReLU(0.1)
    attn4 = attn.reshape(N, TC, L, R)                           # split per caption
    attn4 = attn4 * pl.reciprocal(                              # l2norm over words
        jnp.sqrt(jnp.sum(attn4 * attn4, axis=2, keepdims=True)) + EPS,
        approx=True)
    attn4 = _k_softmax_last(attn4 * 9.0)                        # softmax over regions
    attn = attn4.reshape(N, M, R)
    wctx = jnp.einsum('nmr,nre->nme', attn.astype(jnp.bfloat16), img,
                      preferred_element_type=jnp.float32)       # (N, M, E)
    wctx = _k_l2norm(wctx)

    diff_loc = (wctx.reshape(N, TC, L, E) - cap[None]) ** 2     # (N, TC, L, E)
    diff_glo = (img_glo[:, None, :] - cap_glo[None, :, :]) ** 2  # (N, TC, E)

    # ---- similarity transforms as single 2D GEMMs over the fused batch ----
    sim_loc = jnp.dot(diff_loc.reshape(B * L, E).astype(jnp.bfloat16),
                      wloc_ref[...],
                      preferred_element_type=jnp.float32) + bloc_ref[...]
    sim_loc = _k_l2norm(sim_loc).reshape(B, L, D)                # (B, L, D)
    sim_glo = jnp.dot(diff_glo.reshape(B, E).astype(jnp.bfloat16),
                      wglo_ref[...],
                      preferred_element_type=jnp.float32) + bglo_ref[...]
    sim_glo = _k_l2norm(sim_glo)                                 # (B, D)

    pieces = [sim_glo.reshape(B, 1, D), sim_loc]
    if Mp > n_tok:
        pieces.append(jnp.zeros((B, Mp - n_tok, D), jnp.float32))
    emb = jnp.concatenate(pieces, axis=1)                        # (B, Mp, D)

    # padded key columns must not receive softmax mass
    col = jax.lax.broadcasted_iota(jnp.int32, (1, 1, Mp), 2)
    key_mask = jnp.where(col < n_tok, 0.0, -1e9).astype(jnp.float32)

    # ---- SGR graph reasoning; Q and K projections fused into one GEMM ----
    for s in range(S):
        emb_bf = emb.astype(jnp.bfloat16)
        qk = (jnp.dot(emb_bf.reshape(B * Mp, D), wqk_ref[s],
                      preferred_element_type=jnp.float32)
              + bqk_ref[s]).reshape(B, Mp, 2 * D)
        q = qk[:, :, :D].astype(jnp.bfloat16)
        k = qk[:, :, D:].astype(jnp.bfloat16)
        edge = _k_softmax_last(
            jnp.einsum('bmd,bpd->bmp', q, k,
                       preferred_element_type=jnp.float32) + key_mask)
        sgr = jnp.einsum('bmp,bpd->bmd', edge.astype(jnp.bfloat16), emb_bf,
                         preferred_element_type=jnp.float32)
        emb = jnp.maximum(
            jnp.dot(sgr.reshape(B * Mp, D).astype(jnp.bfloat16), wg_ref[s],
                    preferred_element_type=jnp.float32) + bg_ref[s],
            0.0).reshape(B, Mp, D)

    # ---- sim_eval + single whole-tile lane-dense store ----
    sim_vec = emb[:, 0, :]                                       # (B, D)
    # kept as a tiny MXU op (known-good lowering, output lands lane-dense)
    logits = jnp.einsum('od,bd->ob', weval_ref[...], sim_vec,
                        preferred_element_type=jnp.float32) + beval_ref[...]
    out_ref[...] = jax.nn.sigmoid(logits).reshape(1, 1, B)


def similarity_pallas(cap_embs, cap_glo, img_embs, img_glo, p, max_cap_tile=4):
    C, L, E = cap_embs.shape
    N, R, _ = img_embs.shape
    D = p['w_tranloc'].shape[1]
    S = p['sgr_wq'].shape[0]

    # cap the caption tile so the grid has >= 2 steps (v7x megacore shardable)
    max_tile = max(1, min(max_cap_tile, C // 2))
    TC = 1
    for t in range(min(C, max_tile), 0, -1):
        if C % t == 0:
            TC = t
            break
    G = C // TC
    B = N * TC

    cap_glo3 = cap_glo.reshape(C, 1, E)
    w_eval_row = p['w_eval'].reshape(1, D)

    # bf16 MXU operands (f32 accumulation in-kernel); biases stay f32.
    img_bf = img_embs.astype(jnp.bfloat16)
    wloc_bf = p['w_tranloc'].astype(jnp.bfloat16)
    wglo_bf = p['w_tranglo'].astype(jnp.bfloat16)
    # fused SGR Q||K weights/biases: (S, D, 2D) / (S, 1, 2D)
    wqk_bf = jnp.concatenate([p['sgr_wq'], p['sgr_wk']], axis=-1).astype(jnp.bfloat16)
    bqk = jnp.concatenate([p['sgr_bq'], p['sgr_bk']], axis=-1)
    wg_bf = p['sgr_wg'].astype(jnp.bfloat16)

    # grid-constant blocks: same block index every step -> no re-DMA across the
    # grid (default double-buffering; no Buffered(1) probing).
    # TODO(synk): for production gallery sizes (N~128, E~1024) add a grid axis
    # tiling the image dimension N so the constant block fits v7x's 64 MiB VMEM.
    def grid_const(shape):
        return pl.BlockSpec(shape, lambda i: (0,) * len(shape))

    in_specs = [
        pl.BlockSpec((TC, L, E), lambda i: (i, 0, 0)),      # caption tile (f32)
        pl.BlockSpec((TC, 1, E), lambda i: (i, 0, 0)),      # caption globals (f32)
        grid_const((N, R, E)),                              # image regions (bf16)
        grid_const((N, E)),                                 # image globals (f32)
        grid_const((E, D)), grid_const((1, D)),             # sim_tranloc W / b
        grid_const((E, D)), grid_const((1, D)),             # sim_tranglo W / b
        grid_const((S, D, 2 * D)), grid_const((S, 1, 2 * D)),  # SGR fused Q||K W / b
        grid_const((S, D, D)), grid_const((S, 1, D)),       # SGR graph W / b
        grid_const((1, D)), grid_const((1, 1)),             # sim_eval W (row) / b
    ]

    out = pl.pallas_call(
        _similarity_kernel,
        out_shape=jax.ShapeDtypeStruct((G, 1, B), jnp.float32),
        grid=(G,),
        in_specs=in_specs,
        out_specs=pl.BlockSpec((1, 1, B), lambda i: (i, 0, 0)),
        compiler_params=pltpu.CompilerParams(
            dimension_semantics=("parallel",),
            vmem_limit_bytes=_VMEM_LIMIT),
    )(cap_embs, cap_glo3, img_bf, img_glo,
      wloc_bf, p['b_tranloc'], wglo_bf, p['b_tranglo'],
      wqk_bf, bqk, wg_bf, p['sgr_bg'], w_eval_row, p['b_eval'])

    # (G, 1, N*TC), image-major inside each tile -> (n_image, n_caption)
    sims = out.reshape(G, N, TC).transpose(1, 0, 2).reshape(N, G * TC)
    return sims


# ----------------------------------------------------------------------------
# Plain-JAX glue: text encoder (bi-GRU), Visual/Text self-attention, loss
# ----------------------------------------------------------------------------
def _gru_direction(x, p):
    # TODO(synk): sequential GRU recurrence has no clean Pallas equivalent; kept in lax.scan.
    B, T, _ = x.shape
    H = p['Whh'].shape[1]

    def step(h, xt):
        gi = xt @ p['Wih'].T + p['bih']
        gh = h @ p['Whh'].T + p['bhh']
        i_r, i_z, i_n = jnp.split(gi, 3, axis=-1)
        h_r, h_z, h_n = jnp.split(gh, 3, axis=-1)
        r = jax.nn.sigmoid(i_r + h_r)
        z = jax.nn.sigmoid(i_z + h_z)
        n = jnp.tanh(i_n + r * h_n)
        h_new = (1.0 - z) * n + z * h
        return h_new, h_new

    h0 = jnp.zeros((B, H), x.dtype)
    _, hs = jax.lax.scan(step, h0, jnp.swapaxes(x, 0, 1))
    return jnp.swapaxes(hs, 0, 1)


def encode_text(captions, p):
    x = p['embed'][captions]                          # (B, T, txt_dim); dropout = eval identity
    h_fwd = _gru_direction(x, p['gru_fwd'])
    h_bwd = _gru_direction(x[:, ::-1], p['gru_bwd'])[:, ::-1]
    cap = (h_fwd + h_bwd) / 2.0                       # average of bi-GRU halves
    return _l2norm(cap, axis=-1)


def visual_sa(local, raw_global, p):
    # TODO(synk): BatchNorm1d uses eval-mode running stats (mean=0, var=1) => pure scale.
    l = jnp.tanh((local @ p['Wl'] + p['bl']) * _BN_EVAL_SCALE)
    g = jnp.tanh((raw_global @ p['Wg'] + p['bg']) * _BN_EVAL_SCALE)[:, None, :]
    w = jax.nn.softmax(((l * g) @ p['Wc'] + p['bc'])[..., 0], axis=1)
    new_g = jnp.sum(w[..., None] * local, axis=1)
    return _l2norm(new_g, axis=-1)


def text_sa(local, raw_global, p):
    l = jnp.tanh(local @ p['Wl'] + p['bl'])
    g = jnp.tanh(raw_global @ p['Wg'] + p['bg'])[:, None, :]
    w = jax.nn.softmax(((l * g) @ p['Wc'] + p['bc'])[..., 0], axis=1)
    new_g = jnp.sum(w[..., None] * local, axis=1)
    return _l2norm(new_g, axis=-1)


def contrastive_loss_warmup(scores, margin):
    diag = jnp.diagonal(scores)
    cost_s = jnp.maximum(margin + scores - diag[:, None], 0.0)
    cost_im = jnp.maximum(margin + scores - diag[None, :], 0.0)
    mask = jnp.eye(scores.shape[0], dtype=bool)
    cost_s = jnp.where(mask, 0.0, cost_s)
    cost_im = jnp.where(mask, 0.0, cost_im)
    return cost_s.mean(axis=1).sum() + cost_im.mean(axis=0).sum()


def sgraf_forward(params, images, captions, lengths, margin=0.2):
    # forward(..., hard_negative='warmup', method='triplet') of SGRAF
    del lengths  # all captions are full-length in this synthetic setup
    img_embs = encode_image(images, params['img_w'], params['img_b'])     # Pallas
    cap_embs = encode_text(captions, params)                              # JAX glue
    img_glo = visual_sa(img_embs, img_embs.mean(axis=1), params['vsa'])
    cap_glo = text_sa(cap_embs, cap_embs.mean(axis=1), params['tsa'])
    sims = similarity_pallas(cap_embs, cap_glo, img_embs, img_glo,
                             params)                                      # Pallas, (n_image, n_caption)
    loss = contrastive_loss_warmup(sims, margin)
    return loss, sims


# ----------------------------------------------------------------------------
# Deterministic parameter initialization (shapes from SGRAF.__init__)
# ----------------------------------------------------------------------------
def _xavier_uniform(key, fan_in, fan_out):
    r = math.sqrt(6.0) / math.sqrt(fan_in + fan_out)
    return jax.random.uniform(key, (fan_in, fan_out), jnp.float32, -r, r)


def _gru_params(key, in_dim, hidden):
    k = 1.0 / math.sqrt(hidden)
    ks = jax.random.split(key, 4)
    return dict(
        Wih=jax.random.uniform(ks[0], (3 * hidden, in_dim), jnp.float32, -k, k),
        Whh=jax.random.uniform(ks[1], (3 * hidden, hidden), jnp.float32, -k, k),
        bih=jax.random.uniform(ks[2], (3 * hidden,), jnp.float32, -k, k),
        bhh=jax.random.uniform(ks[3], (3 * hidden,), jnp.float32, -k, k),
    )


def init_params(key, args):
    E, D = args['embed_dim'], args['sim_dim']
    Di, Dt, V = args['img_dim'], args['txt_dim'], args['vocab_size']
    S = args['sgr_step']
    keys = iter(jax.random.split(key, 32 + 3 * S))
    nxt = lambda: next(keys)
    p = {}
    p['img_w'] = _xavier_uniform(nxt(), Di, E)
    p['img_b'] = jnp.zeros((E,), jnp.float32)
    p['embed'] = jax.random.uniform(nxt(), (V, Dt), jnp.float32, -0.1, 0.1)
    p['gru_fwd'] = _gru_params(nxt(), Dt, E)
    p['gru_bwd'] = _gru_params(nxt(), Dt, E)
    p['vsa'] = dict(Wl=_xavier_uniform(nxt(), E, E), bl=jnp.zeros((E,), jnp.float32),
                    Wg=_xavier_uniform(nxt(), E, E), bg=jnp.zeros((E,), jnp.float32),
                    Wc=_xavier_uniform(nxt(), E, 1), bc=jnp.zeros((1,), jnp.float32))
    p['tsa'] = dict(Wl=_xavier_uniform(nxt(), E, E), bl=jnp.zeros((E,), jnp.float32),
                    Wg=_xavier_uniform(nxt(), E, E), bg=jnp.zeros((E,), jnp.float32),
                    Wc=_xavier_uniform(nxt(), E, 1), bc=jnp.zeros((1,), jnp.float32))
    p['w_tranloc'] = _xavier_uniform(nxt(), E, D)
    p['b_tranloc'] = jnp.zeros((1, D), jnp.float32)
    p['w_tranglo'] = _xavier_uniform(nxt(), E, D)
    p['b_tranglo'] = jnp.zeros((1, D), jnp.float32)
    p['w_eval'] = _xavier_uniform(nxt(), D, 1)
    p['b_eval'] = jnp.zeros((1, 1), jnp.float32)
    p['sgr_wq'] = jnp.stack([_xavier_uniform(nxt(), D, D) for _ in range(S)])
    p['sgr_wk'] = jnp.stack([_xavier_uniform(nxt(), D, D) for _ in range(S)])
    p['sgr_wg'] = jnp.stack([_xavier_uniform(nxt(), D, D) for _ in range(S)])
    p['sgr_bq'] = jnp.zeros((S, 1, D), jnp.float32)
    p['sgr_bk'] = jnp.zeros((S, 1, D), jnp.float32)
    p['sgr_bg'] = jnp.zeros((S, 1, D), jnp.float32)
    return p


# ----------------------------------------------------------------------------
if __name__ == "__main__":
    args = dict(img_dim=64, embed_dim=32, sim_dim=16, txt_dim=24, vocab_size=100,
                num_layers=1, bi_gru=True, module_name='SGR', sgr_step=3,
                margin=0.2, tau=0.1, no_imgnorm=False, no_txtnorm=False)
    B, R, L = 4, 36, 8     # 4 image/caption pairs, 36 regions, 8 words

    root = jax.random.PRNGKey(0)
    k_params, k_img, k_cap = jax.random.split(root, 3)
    params = init_params(k_params, args)
    images = jax.random.normal(k_img, (B, R, args['img_dim']), jnp.float32)
    captions = jax.random.randint(k_cap, (B, L), 1, args['vocab_size'])
    lengths = [L] * B

    loss, sims = sgraf_forward(params, images, captions, lengths,
                               margin=args['margin'])
    loss = jax.block_until_ready(loss)
    sims = jax.block_until_ready(sims)
    assert sims.shape == (B, B)
    assert bool(jnp.isfinite(loss)) and bool(jnp.all(jnp.isfinite(sims)))
    print("KERNEL_OK")
</pallas_src>

<mosaic_0001>
module attributes {stable_mosaic.version = 11 : i64} {
  func.func @_img_enc_kernel(%arg0: i32, %arg1: memref<144x64xf32, #tpu.memory_space<vmem>>, %arg2: memref<64x32xbf16, #tpu.memory_space<vmem>>, %arg3: memref<1x32xf32, #tpu.memory_space<vmem>>, %arg4: memref<144x32xf32, #tpu.memory_space<vmem>>) attributes {dimension_semantics = [#tpu.dimension_semantics<parallel>], iteration_bounds = array<i64: 1>, scalar_prefetch = 0 : i64, scratch_operands = 0 : i64, tpu.core_type = #tpu.core_type<tc>, window_params = [{transform_indices = @transform_0, window_bounds = array<i64: 144, 64>}, {pipeline_mode = #tpu.pipeline_mode<synchronous>, transform_indices = @transform_1, window_bounds = array<i64: 64, 32>}, {pipeline_mode = #tpu.pipeline_mode<synchronous>, transform_indices = @transform_2, window_bounds = array<i64: 1, 32>}, {transform_indices = @transform_3, window_bounds = array<i64: 144, 32>}]} {
    %c0 = arith.constant 0 : index
    %c0_0 = arith.constant 0 : index
    %0 = vector.load %arg1[%c0, %c0_0] : memref<144x64xf32, #tpu.memory_space<vmem>>, vector<144x64xf32>
    %1 = arith.truncf %0 : vector<144x64xf32> to vector<144x64xbf16>
    %c0_1 = arith.constant 0 : index
    %c0_2 = arith.constant 0 : index
    %2 = vector.load %arg2[%c0_1, %c0_2] : memref<64x32xbf16, #tpu.memory_space<vmem>>, vector<64x32xbf16>
    %cst = arith.constant dense<0.000000e+00> : vector<144x32xf32>
    %3 = tpu.matmul %1, %2, %cst {dimension_numbers = #tpu.dot_dimension_numbers<[1], [0], [0], [1], [0, 0, 1, 1], [], []>} : vector<144x64xbf16>, vector<64x32xbf16>, vector<144x32xf32> -> vector<144x32xf32>
    %c0_3 = arith.constant 0 : index
    %c0_4 = arith.constant 0 : index
    %4 = vector.load %arg3[%c0_3, %c0_4] : memref<1x32xf32, #tpu.memory_space<vmem>>, vector<1x32xf32>
    %5 = vector.broadcast %4 : vector<1x32xf32> to vector<144x32xf32>
    %6 = arith.addf %3, %5 : vector<144x32xf32>
    %7 = arith.mulf %6, %6 : vector<144x32xf32>
    %cst_5 = arith.constant dense<0.000000e+00> : vector<144xf32>
    %8 = vector.multi_reduction <add>, %7, %cst_5 [1] : vector<144x32xf32> to vector<144xf32>
    %9 = vector.shape_cast %8 : vector<144xf32> to vector<144x1xf32>
    %10 = math.sqrt %9 : vector<144x1xf32>
    %cst_6 = arith.constant 9.99999993E-9 : f32
    %11 = vector.broadcast %cst_6 : f32 to vector<144x1xf32>
    %12 = arith.addf %10, %11 : vector<144x1xf32>
    %13 = tpu.reciprocal %12 {approx = true} : vector<144x1xf32> -> vector<144x1xf32>
    %14 = vector.broadcast %13 : vector<144x1xf32> to vector<144x32xf32>
    %15 = arith.mulf %6, %14 : vector<144x32xf32>
    %c0_7 = arith.constant 0 : index
    %c0_8 = arith.constant 0 : index
    %16 = vector.load %arg4[%c0_7, %c0_8] : memref<144x32xf32, #tpu.memory_space<vmem>>, vector<144x32xf32>
    tpu.vector_store %arg4[%c0_7, %c0_8], %15 {strides = array<i32>} : memref<144x32xf32, #tpu.memory_space<vmem>>, vector<144x32xf32>,
    return
  }
  func.func @transform_0(%arg0: i32) -> (i32, i32) {
    %c0_i32 = arith.constant 0 : i32
    %c0_i32_0 = arith.constant 0 : i32
    return %arg0, %c0_i32 : i32, i32
  }
  func.func @transform_1(%arg0: i32) -> (i32, i32) {
    %c0_i32 = arith.constant 0 : i32
    %c0_i32_0 = arith.constant 0 : i32
    %c0_i32_1 = arith.constant 0 : i32
    return %c0_i32, %c0_i32_0 : i32, i32
  }
  func.func @transform_2(%arg0: i32) -> (i32, i32) {
    %c0_i32 = arith.constant 0 : i32
    %c0_i32_0 = arith.constant 0 : i32
    %c0_i32_1 = arith.constant 0 : i32
    return %c0_i32, %c0_i32_0 : i32, i32
  }
  func.func @transform_3(%arg0: i32) -> (i32, i32) {
    %c0_i32 = arith.constant 0 : i32
    %c0_i32_0 = arith.constant 0 : i32
    return %arg0, %c0_i32 : i32, i32
  }
}

</mosaic_0001>

<bundles_post_ra>
// kernel: tpu_custom_call.1
= control target key start
LH: loop header
LB: loop body
LE: loop exit
PB: predicated region body
PF: predicated region fallthrough
CT: control target
= control target key end

     0   :  { %v646_v0 = vmov 0.0   ;;  %vm647_vm0 = vmmov 0   ;;  %vm81_vm1 = vcmask 523264   ;;  %vm232_vm2 = vcmask 261120   ;;  %s1111_s1 = inlined_call_operand.vmem [shape: bf16[64,32], index: 1, kind: input, shape index: {}]   ;;  %s1112_s0 = inlined_call_operand.vmem [shape: f32[144,64], index: 0, kind: input, shape index: {}]   ;;  %s1113_s2 = inlined_call_operand.vmem [shape: f32[1,32], index: 2, kind: input, shape index: {}]   ;;  %s1114_s3 = inlined_call_operand.vmem [shape: f32[144,32], index: 3, kind: output, shape index: {}]  }
   0x1   :  { %516 = vmatprep.subr.bf16.mxu0 %v646_v0  ;;  %560 = vmatprep.subr.bf16.mxu1 %v646_v0  ;;  %v570_v1 = vld [vmem:[%s1111_s1 + $0x18] sm:$0xff]   ;;  %v571_v2 = vld [vmem:[%s1111_s1 + $0x10] sm:$0xff]   ;;  %v572_v3 = vld [vmem:[%s1111_s1 + $0x8] sm:$0xff]  }
   0x2   :  { %524 = vmatprep.mubr.msk.bf16.mxu0 %vm647_vm0, %v646_v0  ;;  %544 = vmatprep.mubr.msk.bf16.mxu1 %vm647_vm0, %v646_v0  ;;  %v573_v4 = vld [vmem:[%s1111_s1] sm:$0xff]   ;;  %v16_v6 = vld [vmem:[%s1112_s0 + $0x8] sm:$0xff]  ;;  %v25_v7 = vld [vmem:[%s1112_s0 + $0x50] sm:$0xff] }
   0x3   :  { %517 = vmatpush3.bf16.msra.mxu0 %v570_v1  ;;  %564 = vmatpush3.bf16.msra.mxu1 %v570_v1  ;;  %v15_v5 = vld [vmem:[%s1112_s0] sm:$0xff]  ;;  %v26_v8 = vld [vmem:[%s1112_s0 + $0x58] sm:$0xff]  ;;  %v17_v11 = vld [vmem:[%s1112_s0 + $0x10] sm:$0xff] }
   0x4   :  { %518 = vmatprep.subr.bf16.mxu0 %v646_v0  ;;  %561 = vmatprep.subr.bf16.mxu1 %v646_v0  ;;  %v33_v9 = vpack.c.bf16 %v16_v6, %v15_v5  ;;  %v38_v10 = vpack.c.bf16 %v26_v8, %v25_v7  ;;  %v18_v12 = vld [vmem:[%s1112_s0 + $0x18] sm:$0xff]  ;;  %v27_v13 = vld [vmem:[%s1112_s0 + $0x60] sm:$0xff]  ;;  %v28_v14 = vld [vmem:[%s1112_s0 + $0x68] sm:$0xff] }
   0x5   :  { %v34_v15 = vpack.c.bf16 %v18_v12, %v17_v11  ;;  %v39_v16 = vpack.c.bf16 %v28_v14, %v27_v13  ;;  %v19_v17 = vld [vmem:[%s1112_s0 + $0x20] sm:$0xff]  ;;  %v20_v18 = vld [vmem:[%s1112_s0 + $0x28] sm:$0xff]  ;;  %v29_v19 = vld [vmem:[%s1112_s0 + $0x70] sm:$0xff] }
   0x6   :  { %v30_v20 = vld [vmem:[%s1112_s0 + $0x78] sm:$0xff]  ;;  %v35_v21 = vpack.c.bf16 %v20_v18, %v19_v17  ;;  %v21_v23 = vld [vmem:[%s1112_s0 + $0x30] sm:$0xff]  ;;  %v31_v25 = vld [vmem:[%s1112_s0 + $0x80] sm:$0xff] }
   0x7   :  { %519 = vmatpush3.bf16.msra.mxu0 %v571_v2  ;;  %565 = vmatpush3.bf16.msra.mxu1 %v571_v2  ;;  %v40_v22 = vpack.c.bf16 %v30_v20, %v29_v19  ;;  %v22_v24 = vld [vmem:[%s1112_s0 + $0x38] sm:$0xff]  ;;  %v32_v26 = vld [vmem:[%s1112_s0 + $0x88] sm:$0xff]  ;;  %v23_v29 = vld [vmem:[%s1112_s0 + $0x40] sm:$0xff] }
   0x8   :  { %520 = vmatprep.subr.bf16.mxu0 %v646_v0  ;;  %562 = vmatprep.subr.bf16.mxu1 %v646_v0  ;;  %v36_v27 = vpack.c.bf16 %v22_v24, %v21_v23  ;;  %v41_v28 = vpack.c.bf16 %v32_v26, %v31_v25  ;;  %v24_v30 = vld [vmem:[%s1112_s0 + $0x48] sm:$0xff]  ;;  %v772_v32 = vld [vmem:[%s1113_s2] ss:$0 sm:$0xff] }
   0x9   :  { %v37_v31 = vpack.c.bf16 %v24_v30, %v23_v29 }
   0xb   :  { %521 = vmatpush3.bf16.msra.mxu0 %v572_v3  ;;  %566 = vmatpush3.bf16.msra.mxu1 %v572_v3 }
   0xc   :  { %522 = vmatprep.subr.bf16.mxu0 %v646_v0  ;;  %563 = vmatprep.subr.bf16.mxu1 %v646_v0 }
   0xf   :  { %523 = vmatpush3.bf16.msra.mxu0 %v573_v4  ;;  %567 = vmatpush3.bf16.msra.mxu1 %v573_v4 }
  0x12   :  { %525 = vmatmul.mubr.msk.bf16.vlgmr.msra.gmra.mxu0 %vm81_vm1, %v33_v9  ;;  %545 = vmatmul.mubr.msk.bf16.vlgmr.msra.gmra.mxu1 %vm81_vm1, %v38_v10 }
  0x13   :  { %528 = vmatprep.mubr.msk.bf16.mxu0 %vm647_vm0, %v646_v0  ;;  %548 = vmatprep.mubr.msk.bf16.mxu1 %vm647_vm0, %v646_v0 }
  0x1a   :  { %529 = vmatmul.mubr.msk.bf16.gmra.mxu0 %vm81_vm1, %v34_v15  ;;  %549 = vmatmul.mubr.msk.bf16.gmra.mxu1 %vm81_vm1, %v39_v16 }
  0x1b   :  { %532 = vmatprep.mubr.msk.bf16.mxu0 %vm647_vm0, %v646_v0  ;;  %552 = vmatprep.mubr.msk.bf16.mxu1 %vm647_vm0, %v646_v0 }
  0x22   :  { %533 = vmatmul.mubr.msk.bf16.gmra.mxu0 %vm81_vm1, %v35_v21  ;;  %553 = vmatmul.mubr.msk.bf16.gmra.mxu1 %vm81_vm1, %v40_v22 }
  0x23   :  { %536 = vmatprep.mubr.msk.bf16.mxu0 %vm647_vm0, %v646_v0  ;;  %556 = vmatprep.mubr.msk.bf16.mxu1 %vm647_vm0, %v646_v0 }
  0x2a   :  { %537 = vmatmul.mubr.msk.bf16.gmra.mxu0 %vm81_vm1, %v36_v27  ;;  %557 = vmatmul.mubr.msk.bf16.gmra.mxu1 %vm81_vm1, %v41_v28 }
  0x2b   :  { %540 = vmatprep.mubr.msk.bf16.mxu0 %vm647_vm0, %v646_v0 }
  0x32   :  { %541 = vmatmul.mubr.msk.bf16.gmra.mxu0 %vm81_vm1, %v37_v31 }
  0xd2   :  { %v143_v33 = vpop.f32.mrf.mxu0  ;;  %v183_v34 = vpop.f32.mrf.mxu1 }
  0xd3   :  { %v775_v35 = vadd.f32 %v772_v32, %v143_v33  ;;  %v778_v36 = vadd.f32 %v772_v32, %v183_v34 }
  0xd4   :  { %v526_v37 = vpop.f32.mrf.mxu0  ;;  %v546_v38 = vpop.f32.mrf.mxu1 }
  0xd5   :  { %v214_v39 = vmul.f32 %v775_v35, %v775_v35  ;;  %v224_v40 = vmul.f32 %v778_v36, %v778_v36 }
  0xd6   :  { %v146_v41 = vpop.f32.mrf.mxu0  ;;  %v186_v42 = vpop.f32.mrf.mxu1 }
  0xd7   :  { %v785_v43 = vadd.f32 %v772_v32, %v146_v41  ;;  %v788_v44 = vadd.f32 %v772_v32, %v186_v42  ;;  %v233_v45 = vsel %vm232_vm2, %v214_v39, 0.0  ;;  %v263_v49 = vsel %vm232_vm2, %v224_v40, 0.0 }
  0xd8   :  { %v547_v46 = vpop.f32.mrf.mxu1  ;;  %234 = vadd.xlane.f32.xlu0 %v233_v45  ;;  %v527_v47 = vpop.f32.mrf.mxu0 }
  0xd9   :  { %v225_v48 = vmul.f32 %v788_v44, %v788_v44  ;;  %v215_v55 = vmul.f32 %v785_v43, %v785_v43 }
  0xda   :  { %v151_v50 = vpop.f32.mrf.mxu0  ;;  %v191_v51 = vpop.f32.mrf.mxu1 }
  0xdb   :  { %v795_v52 = vadd.f32 %v772_v32, %v151_v50  ;;  %v266_v53 = vsel %vm232_vm2, %v225_v48, 0.0  ;;  %v799_v54 = vadd.f32 %v772_v32, %v191_v51  ;;  %v236_v0 = vsel %vm232_vm2, %v215_v55, 0.0 }
  0xdc   :  { %267 = vadd.xlane.f32.xlu1 %v266_v53  ;;  %264 = vadd.xlane.f32.xlu0 %v263_v49  ;;  %v530_v56 = vpop.f32.mrf.mxu0  ;;  %v550_v57 = vpop.f32.mrf.mxu1 }
  0xdd   :  { %v216_v58 = vmul.f32 %v795_v52, %v795_v52  ;;  %v226_v59 = vmul.f32 %v799_v54, %v799_v54 }
  0xde   :  { %v154_v60 = vpop.f32.mrf.mxu0  ;;  %v194_v61 = vpop.f32.mrf.mxu1 }
  0xdf   :  { %v808_v62 = vadd.f32 %v772_v32, %v154_v60  ;;  %v811_v63 = vadd.f32 %v772_v32, %v194_v61  ;;  %v239_v1 = vsel %vm232_vm2, %v216_v58, 0.0  ;;  %v269_v4 = vsel %vm232_vm2, %v226_v59, 0.0 }
  0xe0   :  { %237 = vadd.xlane.f32.xlu0 %v236_v0  ;;  %240 = vadd.xlane.f32.xlu1 %v239_v1  ;;  %v531_v2 = vpop.f32.mrf.mxu0  ;;  %v551_v3 = vpop.f32.mrf.mxu1 }
  0xe1   :  { %v217_v5 = vmul.f32 %v808_v62, %v808_v62  ;;  %v227_v6 = vmul.f32 %v811_v63, %v811_v63 }
  0xe2   :  { %v159_v7 = vpop.f32.mrf.mxu0  ;;  %v199_v8 = vpop.f32.mrf.mxu1 }
  0xe3   :  { %v821_v9 = vadd.f32 %v772_v32, %v159_v7  ;;  %v824_v10 = vadd.f32 %v772_v32, %v199_v8  ;;  %v242_v11 = vsel %vm232_vm2, %v217_v5, 0.0  ;;  %v272_v14 = vsel %vm232_vm2, %v227_v6, 0.0 }
  0xe4   :  { %270 = vadd.xlane.f32.xlu0 %v269_v4  ;;  %243 = vadd.xlane.f32.xlu1 %v242_v11  ;;  %v534_v12 = vpop.f32.mrf.mxu0  ;;  %v554_v13 = vpop.f32.mrf.mxu1 }
  0xe5   :  { %v218_v15 = vmul.f32 %v821_v9, %v821_v9  ;;  %v228_v16 = vmul.f32 %v824_v10, %v824_v10 }
  0xe6   :  { %v162_v17 = vpop.f32.mrf.mxu0  ;;  %v202_v18 = vpop.f32.mrf.mxu1 }
  0xe7   :  { %v833_v19 = vadd.f32 %v772_v32, %v162_v17  ;;  %v836_v20 = vadd.f32 %v772_v32, %v202_v18  ;;  %v245_v21 = vsel %vm232_vm2, %v218_v15, 0.0  ;;  %v275_v24 = vsel %vm232_vm2, %v228_v16, 0.0 }
  0xe8   :  { %273 = vadd.xlane.f32.xlu1 %v272_v14  ;;  %246 = vadd.xlane.f32.xlu0 %v245_v21  ;;  %v535_v22 = vpop.f32.mrf.mxu0  ;;  %v555_v23 = vpop.f32.mrf.mxu1 }
  0xe9   :  { %v219_v25 = vmul.f32 %v833_v19, %v833_v19  ;;  %v229_v26 = vmul.f32 %v836_v20, %v836_v20 }
  0xea   :  { %v167_v27 = vpop.f32.mrf.mxu0  ;;  %v207_v28 = vpop.f32.mrf.mxu1 }
  0xeb   :  { %v845_v29 = vadd.f32 %v772_v32, %v167_v27  ;;  %v248_v30 = vsel %vm232_vm2, %v219_v25, 0.0  ;;  %v278_v34 = vsel %vm232_vm2, %v229_v26, 0.0  ;;  %v856_v46 = vadd.f32 %v772_v32, %v207_v28 }
  0xec   :  { %276 = vadd.xlane.f32.xlu0 %v275_v24  ;;  %249 = vadd.xlane.f32.xlu1 %v248_v30  ;;  %v538_v31 = vpop.f32.mrf.mxu0  ;;  %v558_v33 = vpop.f32.mrf.mxu1 }
  0xed   :  { %v220_v37 = vmul.f32 %v845_v29, %v845_v29  ;;  %v230_v55 = vmul.f32 %v856_v46, %v856_v46 }
  0xee   :  { %v170_v38 = vpop.f32.mrf.mxu0  ;;  %v210_v39 = vpop.f32.mrf.mxu1 }
  0xef   :  { %v852_v40 = vadd.f32 %v772_v32, %v170_v38  ;;  %v251_v41 = vsel %vm232_vm2, %v220_v37, 0.0  ;;  %v869_v57 = vadd.f32 %v772_v32, %v210_v39  ;;  %v281_v61 = vsel %vm232_vm2, %v230_v55, 0.0 }
  0xf0   :  { %279 = vadd.xlane.f32.xlu1 %v278_v34  ;;  %252 = vadd.xlane.f32.xlu0 %v251_v41  ;;  %v539_v42 = vpop.f32.mrf.mxu0  ;;  %v559_v45 = vpop.f32.mrf.mxu1 }
  0xf1   :  { %v221_v47 = vmul.f32 %v852_v40, %v852_v40  ;;  %v231_v2 = vmul.f32 %v869_v57, %v869_v57 }
  0xf2   :  { %v175_v48 = vpop.f32.mrf.mxu0 }
  0xf3   :  { %v861_v49 = vadd.f32 %v772_v32, %v175_v48  ;;  %v254_v50 = vsel %vm232_vm2, %v221_v47, 0.0  ;;  %v284_v3 = vsel %vm232_vm2, %v231_v2, 0.0 }
  0xf4   :  { %255 = vadd.xlane.f32.xlu1 %v254_v50  ;;  %v542_v51 = vpop.f32.mrf.mxu0 }
  0xf5   :  { %v222_v53 = vmul.f32 %v861_v49, %v861_v49 }
  0xf6   :  { %v178_v56 = vpop.f32.mrf.mxu0 }
  0xf7   :  { %v872_v58 = vadd.f32 %v772_v32, %v178_v56  ;;  %v257_v59 = vsel %vm232_vm2, %v222_v53, 0.0 }
  0xf8   :  { %258 = vadd.xlane.f32.xlu0 %v257_v59  ;;  %v543_v60 = vpop.f32.mrf.mxu0 }
  0xf9   :  { %v223_v0 = vmul.f32 %v872_v58, %v872_v58 }
  0xfb   :  { %v260_v1 = vsel %vm232_vm2, %v223_v0, 0.0 }
  0xfc   :  { %282 = vadd.xlane.f32.xlu0 %v281_v61  ;;  %261 = vadd.xlane.f32.xlu1 %v260_v1 }
 0x100   :  { %285 = vadd.xlane.f32.xlu1 %v284_v3 }
 0x161   :  { %v235_v32 = vpop.xlane.xlu0 %234 }
 0x162   :  { %574 = vrsqrt.f32 %v235_v32  ;;  %vm289_vm3 = vcmp.eq.f32.partialorder %v235_v32, inf  ;;  %v292_v14 = vand.u32 2147483648, %v235_v32  ;;  %vm291_vm4 = vcmp.eq.f32.partialorder %v235_v32, 0.0 }
 0x165   :  { %v268_v4 = vpop.xlane.xlu1 %267  ;;  %v265_v5 = vpop.xlane.xlu0 %264 }
 0x166   :  { %576 = vrsqrt.f32 %v268_v4  ;;  %vm366_vm5 = vcmp.eq.f32.partialorder %v268_v4, inf  ;;  %vm368_vm6 = vcmp.eq.f32.partialorder %v268_v4, 0.0  ;;  %v369_v22 = vand.u32 2147483648, %v268_v4 }
 0x167   :  { %578 = vrsqrt.f32 %v265_v5  ;;  %vm359_vm7 = vcmp.eq.f32.partialorder %v265_v5, inf  ;;  %vm361_vm8 = vcmp.eq.f32.partialorder %v265_v5, 0.0  ;;  %v362_v27 = vand.u32 2147483648, %v265_v5 }
 0x169   :  { %v238_v6 = vpop.xlane.xlu0 %237  ;;  %v882_v7 = vpop.xlane.xlu1 %240 }
 0x16a   :  { %580 = vrsqrt.f32 %v238_v6  ;;  %vm296_vm9 = vcmp.eq.f32.partialorder %v238_v6, inf  ;;  %vm298_vm10 = vcmp.eq.f32.partialorder %v238_v6, 0.0  ;;  %v299_v33 = vand.u32 2147483648, %v238_v6 }
 0x16b   :  { %582 = vrsqrt.f32 %v882_v7  ;;  %vm303_vm11 = vcmp.eq.f32.partialorder %v882_v7, inf  ;;  %vm305_vm12 = vcmp.eq.f32.partialorder %v882_v7, 0.0  ;;  %v306_v50 = vand.u32 2147483648, %v882_v7 }
 0x16d   :  { %v885_v8 = vpop.xlane.xlu0 %270  ;;  %v887_v11 = vpop.xlane.xlu1 %243 }
 0x16e   :  { %584 = vrsqrt.f32 %v885_v8  ;;  %vm373_vm13 = vcmp.eq.f32.partialorder %v885_v8, inf  ;;  %vm375_vm14 = vcmp.eq.f32.partialorder %v885_v8, 0.0  ;;  %v376_v55 = vand.u32 2147483648, %v885_v8 }
 0x16f   :  { %v575_v12 = vpop.eup %574  ;;  %586 = vrsqrt.f32 %v887_v11  ;;  %vm310_vm15 = vcmp.eq.f32.partialorder %v887_v11, inf  ;;  %vm312_vm0 = vcmp.eq.f32.partialorder %v887_v11, 0.0 }
 0x170   :  { %v288_v13 = vmul.f32 %v575_v12, %v235_v32 }
 0x171   :  { %v891_v15 = vpop.xlane.xlu1 %273  ;;  %v893_v16 = vpop.xlane.xlu0 %246 }
 0x172   :  { %v290_v17 = vsel %vm289_vm3, %v235_v32, %v288_v13  ;;  %588 = vrsqrt.f32 %v891_v15  ;;  %vm380_vm1 = vcmp.eq.f32.partialorder %v891_v15, inf  ;;  %vm382_vm3 = vcmp.eq.f32.partialorder %v891_v15, 0.0 }
 0x173   :  { %v577_v18 = vpop.eup %576  ;;  %v293_v21 = vsel %vm291_vm4, %v292_v14, %v290_v17  ;;  %590 = vrsqrt.f32 %v893_v16  ;;  %vm317_vm4 = vcmp.eq.f32.partialorder %v893_v16, inf }
 0x174   :  { %v579_v23 = vpop.eup %578  ;;  %v413_v24 = vadd.f32 1e-08, %v293_v21  ;;  %v365_v25 = vmul.f32 %v577_v18, %v268_v4 }
 0x175   :  { %v358_v26 = vmul.f32 %v579_v23, %v265_v5  ;;  %v897_v28 = vpop.xlane.xlu0 %276  ;;  %v899_v30 = vpop.xlane.xlu1 %249 }
 0x176   :  { %592 = vrcp.f32 %v413_v24  ;;  %v367_v31 = vsel %vm366_vm5, %v268_v4, %v365_v25  ;;  %v383_v24 = vand.u32 2147483648, %v891_v15  ;;  %vm319_vm5 = vcmp.eq.f32.partialorder %v893_v16, 0.0 }
 0x177   :  { %v581_v34 = vpop.eup %580  ;;  %v370_v37 = vsel %vm368_vm6, %v369_v22, %v367_v31  ;;  %v360_v38 = vsel %vm359_vm7, %v265_v5, %v358_v26  ;;  %594 = vrsqrt.f32 %v897_v28  ;;  %v320_v26 = vand.u32 2147483648, %v893_v16 }
 0x178   :  { %v583_v39 = vpop.eup %582  ;;  %v424_v41 = vadd.f32 1e-08, %v370_v37  ;;  %v363_v42 = vsel %vm361_vm8, %v362_v27, %v360_v38  ;;  %v295_v45 = vmul.f32 %v581_v34, %v238_v6  ;;  %596 = vrsqrt.f32 %v899_v30 }
 0x179   :  { %v423_v47 = vadd.f32 1e-08, %v363_v42  ;;  %v302_v48 = vmul.f32 %v583_v39, %v882_v7  ;;  %v911_v51 = vpop.xlane.xlu1 %279  ;;  %v916_v56 = vpop.xlane.xlu0 %252  ;;  %vm387_vm6 = vcmp.eq.f32.partialorder %v897_v28, inf  ;;  %vm389_vm7 = vcmp.eq.f32.partialorder %v897_v28, 0.0 }
 0x17a   :  { %598 = vrcp.f32 %v424_v41  ;;  %v297_v53 = vsel %vm296_vm9, %v238_v6, %v295_v45  ;;  %vm324_vm8 = vcmp.eq.f32.partialorder %v899_v30, inf  ;;  %vm326_vm9 = vcmp.eq.f32.partialorder %v899_v30, 0.0 }
 0x17b   :  { %v585_v59 = vpop.eup %584  ;;  %600 = vrcp.f32 %v423_v47  ;;  %v300_v60 = vsel %vm298_vm10, %v299_v33, %v297_v53  ;;  %v304_v61 = vsel %vm303_vm11, %v882_v7, %v302_v48  ;;  %v313_v7 = vand.u32 2147483648, %v887_v11 }
 0x17c   :  { %v587_v0 = vpop.eup %586  ;;  %v414_v1 = vadd.f32 1e-08, %v300_v60  ;;  %v307_v2 = vsel %vm305_vm12, %v306_v50, %v304_v61  ;;  %v372_v3 = vmul.f32 %v585_v59, %v885_v8  ;;  %602 = vrsqrt.f32 %v911_v51 }
 0x17d   :  { %v415_v32 = vadd.f32 1e-08, %v307_v2  ;;  %v309_v4 = vmul.f32 %v587_v0, %v887_v11  ;;  %604 = vrsqrt.f32 %v916_v56  ;;  %v930_v5 = vpop.xlane.xlu1 %255  ;;  %v327_v53 = vand.u32 2147483648, %v899_v30 }
 0x17e   :  { %606 = vrcp.f32 %v414_v1  ;;  %v374_v6 = vsel %vm373_vm13, %v885_v8, %v372_v3  ;;  %vm394_vm10 = vcmp.eq.f32.partialorder %v911_v51, inf  ;;  %vm396_vm11 = vcmp.eq.f32.partialorder %v911_v51, 0.0 }
 0x17f   :  { %v589_v12 = vpop.eup %588  ;;  %608 = vrcp.f32 %v415_v32  ;;  %v377_v13 = vsel %vm375_vm14, %v376_v55, %v374_v6  ;;  %v311_v14 = vsel %vm310_vm15, %v887_v11, %v309_v4  ;;  %vm331_vm12 = vcmp.eq.f32.partialorder %v916_v56, inf }
 0x180   :  { %v591_v17 = vpop.eup %590  ;;  %v425_v18 = vadd.f32 1e-08, %v377_v13  ;;  %v314_v21 = vsel %vm312_vm0, %v313_v7, %v311_v14  ;;  %v379_v22 = vmul.f32 %v589_v12, %v891_v15  ;;  %610 = vrsqrt.f32 %v930_v5 }
 0x181   :  { %v416_v23 = vadd.f32 1e-08, %v314_v21  ;;  %v316_v25 = vmul.f32 %v591_v17, %v893_v16  ;;  %v948_v8 = vpop.xlane.xlu0 %258  ;;  %vm333_vm13 = vcmp.eq.f32.partialorder %v916_v56, 0.0  ;;  %v334_v14 = vand.u32 2147483648, %v916_v56 }
 0x182   :  { %612 = vrcp.f32 %v425_v18  ;;  %v381_v11 = vsel %vm380_vm1, %v891_v15, %v379_v22  ;;  %v390_v15 = vand.u32 2147483648, %v897_v28  ;;  %vm338_vm14 = vcmp.eq.f32.partialorder %v930_v5, inf }
 0x183   :  { %v593_v27 = vpop.eup %592  ;;  %614 = vrcp.f32 %v416_v23  ;;  %v384_v31 = vsel %vm382_vm3, %v383_v24, %v381_v11  ;;  %v318_v33 = vsel %vm317_vm4, %v893_v16, %v316_v25  ;;  %vm340_vm15 = vcmp.eq.f32.partialorder %v930_v5, 0.0 }
 0x184   :  { %v595_v34 = vpop.eup %594  ;;  %v449_v37 = vmul.f32 %v593_v27, %v775_v35  ;;  %v426_v38 = vadd.f32 1e-08, %v384_v31  ;;  %v321_v39 = vsel %vm319_vm5, %v320_v26, %v318_v33  ;;  %616 = vrsqrt.f32 %v948_v8 }
 0x185   :  { %v597_v41 = vpop.eup %596  ;;  %v417_v42 = vadd.f32 1e-08, %v321_v39  ;;  %v386_v45 = vmul.f32 %v595_v34, %v897_v28  ;;  %v964_v47 = vpop.xlane.xlu0 %282  ;;  %vm345_vm0 = vcmp.eq.f32.partialorder %v948_v8, inf  ;;  %vm347_vm1 = vcmp.eq.f32.partialorder %v948_v8, 0.0 }
 0x186   :  { %v966_v16 = vpop.xlane.xlu1 %261  ;;  %467 = vst.msk [vmem:[%s1114_s3] sm:$0xff] %vm232_vm2, %v449_v37  ;;  %618 = vrcp.f32 %v426_v38  ;;  %v323_v35 = vmul.f32 %v597_v41, %v899_v30  ;;  %vm401_vm3 = vcmp.eq.f32.partialorder %v964_v47, inf  ;;  %vm403_vm4 = vcmp.eq.f32.partialorder %v964_v47, 0.0 }
 0x187   :  { %v599_v48 = vpop.eup %598  ;;  %620 = vrcp.f32 %v417_v42  ;;  %v388_v50 = vsel %vm387_vm6, %v897_v28, %v386_v45  ;;  %vm352_vm5 = vcmp.eq.f32.partialorder %v966_v16, inf  ;;  %vm354_vm6 = vcmp.eq.f32.partialorder %v966_v16, 0.0 }
 0x188   :  { %v601_v55 = vpop.eup %600  ;;  %v460_v59 = vmul.f32 %v599_v48, %v788_v44  ;;  %v391_v60 = vsel %vm389_vm7, %v390_v15, %v388_v50  ;;  %v325_v61 = vsel %vm324_vm8, %v899_v30, %v323_v35  ;;  %622 = vrsqrt.f32 %v964_v47 }
 0x189   :  { %v603_v0 = vpop.eup %602  ;;  %v459_v1 = vmul.f32 %v601_v55, %v778_v36  ;;  %v427_v2 = vadd.f32 1e-08, %v391_v60  ;;  %v328_v3 = vsel %vm326_vm9, %v327_v53, %v325_v61  ;;  %624 = vrsqrt.f32 %v966_v16 }
 0x18a   :  { %v605_v32 = vpop.eup %604  ;;  %478 = vst.msk [vmem:[%s1114_s3 + $0x58] sm:$0xff] %vm232_vm2, %v460_v59  ;;  %v418_v44 = vadd.f32 1e-08, %v328_v3  ;;  %v393_v28 = vmul.f32 %v603_v0, %v911_v51  ;;  %v397_v30 = vand.u32 2147483648, %v911_v51  ;;  %v994_v4 = vpop.xlane.xlu1 %285  ;;  %v355_v53 = vand.u32 2147483648, %v966_v16 }
 0x18b   :  { %v607_v36 = vpop.eup %606  ;;  %477 = vst.msk [vmem:[%s1114_s3 + $0x50] sm:$0xff] %vm232_vm2, %v459_v1  ;;  %626 = vrcp.f32 %v427_v2  ;;  %v330_v6 = vmul.f32 %v605_v32, %v916_v56  ;;  %vm408_vm7 = vcmp.eq.f32.partialorder %v994_v4, inf  ;;  %vm410_vm8 = vcmp.eq.f32.partialorder %v994_v4, 0.0 }
 0x18c   :  { %v609_v7 = vpop.eup %608  ;;  %v450_v12 = vmul.f32 %v607_v36, %v785_v43  ;;  %628 = vrcp.f32 %v418_v44  ;;  %v395_v13 = vsel %vm394_vm10, %v911_v51, %v393_v28  ;;  %v341_v51 = vand.u32 2147483648, %v930_v5 }
 0x18d   :  { %v611_v17 = vpop.eup %610  ;;  %v451_v18 = vmul.f32 %v609_v7, %v795_v52  ;;  %v398_v21 = vsel %vm396_vm11, %v397_v30, %v395_v13  ;;  %v332_v22 = vsel %vm331_vm12, %v916_v56, %v330_v6  ;;  %630 = vrsqrt.f32 %v994_v4 }
 0x18e   :  { %468 = vst.msk [vmem:[%s1114_s3 + $0x8] sm:$0xff] %vm232_vm2, %v450_v12  ;;  %v428_v43 = vadd.f32 1e-08, %v398_v21  ;;  %v335_v23 = vsel %vm333_vm13, %v334_v14, %v332_v22  ;;  %v337_v24 = vmul.f32 %v611_v17, %v930_v5 }
 0x18f   :  { %v613_v25 = vpop.eup %612  ;;  %469 = vst.msk [vmem:[%s1114_s3 + $0x10] sm:$0xff] %vm232_vm2, %v451_v18  ;;  %v419_v52 = vadd.f32 1e-08, %v335_v23 }
 0x190   :  { %v615_v56 = vpop.eup %614  ;;  %v461_v11 = vmul.f32 %v613_v25, %v799_v54  ;;  %632 = vrcp.f32 %v428_v43  ;;  %v339_v26 = vsel %vm338_vm14, %v930_v5, %v337_v24  ;;  %v348_v54 = vand.u32 2147483648, %v948_v8 }
 0x191   :  { %v617_v27 = vpop.eup %616  ;;  %v452_v31 = vmul.f32 %v615_v56, %v808_v62  ;;  %634 = vrcp.f32 %v419_v52  ;;  %v342_v33 = vsel %vm340_vm15, %v341_v51, %v339_v26 }
 0x192   :  { %479 = vst.msk [vmem:[%s1114_s3 + $0x60] sm:$0xff] %vm232_vm2, %v461_v11  ;;  %v420_v34 = vadd.f32 1e-08, %v342_v33  ;;  %v344_v37 = vmul.f32 %v617_v27, %v948_v8 }
 0x193   :  { %v619_v38 = vpop.eup %618  ;;  %470 = vst.msk [vmem:[%s1114_s3 + $0x18] sm:$0xff] %vm232_vm2, %v452_v31 }
 0x194   :  { %v621_v62 = vpop.eup %620  ;;  %v462_v5 = vmul.f32 %v619_v38, %v811_v63  ;;  %636 = vrcp.f32 %v420_v34  ;;  %v346_v39 = vsel %vm345_vm0, %v948_v8, %v344_v37  ;;  %v404_v63 = vand.u32 2147483648, %v964_v47 }
 0x195   :  { %v623_v41 = vpop.eup %622  ;;  %v453_v42 = vmul.f32 %v621_v62, %v821_v9  ;;  %v349_v45 = vsel %vm347_vm1, %v348_v54, %v346_v39 }
 0x196   :  { %v625_v15 = vpop.eup %624  ;;  %480 = vst.msk [vmem:[%s1114_s3 + $0x68] sm:$0xff] %vm232_vm2, %v462_v5  ;;  %v421_v35 = vadd.f32 1e-08, %v349_v45  ;;  %v400_v48 = vmul.f32 %v623_v41, %v964_v47 }
 0x197   :  { %471 = vst.msk [vmem:[%s1114_s3 + $0x20] sm:$0xff] %vm232_vm2, %v453_v42  ;;  %v351_v9 = vmul.f32 %v625_v15, %v966_v16 }
 0x198   :  { %v627_v8 = vpop.eup %626  ;;  %638 = vrcp.f32 %v421_v35  ;;  %v402_v50 = vsel %vm401_vm3, %v964_v47, %v400_v48 }
 0x199   :  { %v629_v55 = vpop.eup %628  ;;  %v463_v59 = vmul.f32 %v627_v8, %v824_v10  ;;  %v405_v60 = vsel %vm403_vm4, %v404_v63, %v402_v50  ;;  %v353_v61 = vsel %vm352_vm5, %v966_v16, %v351_v9  ;;  %v411_v10 = vand.u32 2147483648, %v994_v4 }
 0x19a   :  { %v631_v0 = vpop.eup %630  ;;  %v454_v1 = vmul.f32 %v629_v55, %v833_v19  ;;  %v429_v2 = vadd.f32 1e-08, %v405_v60  ;;  %v356_v3 = vsel %vm354_vm6, %v355_v53, %v353_v61 }
 0x19b   :  { %481 = vst.msk [vmem:[%s1114_s3 + $0x70] sm:$0xff] %vm232_vm2, %v463_v59  ;;  %v422_v47 = vadd.f32 1e-08, %v356_v3  ;;  %v407_v32 = vmul.f32 %v631_v0, %v994_v4 }
 0x19c   :  { %472 = vst.msk [vmem:[%s1114_s3 + $0x28] sm:$0xff] %vm232_vm2, %v454_v1  ;;  %640 = vrcp.f32 %v429_v2 }
 0x19d   :  { %v633_v19 = vpop.eup %632  ;;  %642 = vrcp.f32 %v422_v47  ;;  %v409_v16 = vsel %vm408_vm7, %v994_v4, %v407_v32 }
 0x19e   :  { %v635_v44 = vpop.eup %634  ;;  %v464_v28 = vmul.f32 %v633_v19, %v836_v20  ;;  %v412_v30 = vsel %vm410_vm8, %v411_v10, %v409_v16 }
 0x19f   :  { %v455_v36 = vmul.f32 %v635_v44, %v845_v29  ;;  %v430_v6 = vadd.f32 1e-08, %v412_v30 }
 0x1a0   :  { %482 = vst.msk [vmem:[%s1114_s3 + $0x78] sm:$0xff] %vm232_vm2, %v464_v28 }
 0x1a1   :  { %v637_v7 = vpop.eup %636  ;;  %473 = vst.msk [vmem:[%s1114_s3 + $0x30] sm:$0xff] %vm232_vm2, %v455_v36  ;;  %644 = vrcp.f32 %v430_v6 }
 0x1a2   :  { %v456_v4 = vmul.f32 %v637_v7, %v852_v40 }
 0x1a4   :  { %474 = vst.msk [vmem:[%s1114_s3 + $0x38] sm:$0xff] %vm232_vm2, %v456_v4 }
 0x1a5   :  { %v639_v20 = vpop.eup %638 }
 0x1a6   :  { %v457_v29 = vmul.f32 %v639_v20, %v861_v49 }
 0x1a8   :  { %475 = vst.msk [vmem:[%s1114_s3 + $0x40] sm:$0xff] %vm232_vm2, %v457_v29 }
 0x1a9   :  { %v641_v12 = vpop.eup %640 }
 0x1aa   :  { %v643_v13 = vpop.eup %642  ;;  %v465_v14 = vmul.f32 %v641_v12, %v856_v46 }
 0x1ab   :  { %v458_v17 = vmul.f32 %v643_v13, %v872_v58 }
 0x1ac   :  { %483 = vst.msk [vmem:[%s1114_s3 + $0x80] sm:$0xff] %vm232_vm2, %v465_v14 }
 0x1ad   :  { %476 = vst.msk [vmem:[%s1114_s3 + $0x48] sm:$0xff] %vm232_vm2, %v458_v17 }
 0x1ae   :  { %v645_v40 = vpop.eup %644 }
 0x1af   :  { %v466_v49 = vmul.f32 %v645_v40, %v869_v57 }
 0x1b1   :  { %484 = vst.msk [vmem:[%s1114_s3 + $0x88] sm:$0xff] %vm232_vm2, %v466_v49 }

</bundles_post_ra>
